<compile_context>
chip_gen: v7x
topology: tpu7x:2x2x1
jax: 0.10.0
libtpu: 0.0.40
codegen_flags: <defaults>
</compile_context>

<pallas_src>
import functools

import jax
import jax.numpy as jnp
from jax.experimental import pallas as pl
from jax.experimental.pallas import tpu as pltpu


def _cdiv(a, b):
    return -(-a // b)


def _round_up(v, m):
    return _cdiv(v, m) * m


def _fit_dim(dim, tile_target, granule):
    """Minimal padding + tile choice for one dimension.

    Pads `dim` only to a multiple of `granule` (sublane/lane granularity),
    then picks a tile that is a multiple of `granule`, at most ~tile_target,
    and divides the padded size.  Avoids padding M all the way up to a tile
    multiple (old behaviour: 300 -> 512, ~70% wasted MXU work; now 300 -> 304).
    Returns (padded_dim, tile).
    """
    padded = _round_up(dim, granule)
    if padded <= tile_target:
        return padded, padded
    nblk = _cdiv(padded, tile_target)
    tile = _round_up(_cdiv(padded, nblk), granule)
    return tile * nblk, tile


def _linear_kernel_streamed(x_ref, wt_ref, b_ref, o_ref, acc_ref):
    """Streamed path: x (tm,tk) @ W^T tile (tk,tn); K reduced on grid axis 2."""
    k = pl.program_id(2)

    @pl.when(k == 0)
    def _():
        acc_ref[...] = jnp.zeros_like(acc_ref)

    acc_ref[...] += jnp.dot(x_ref[...], wt_ref[...],
                            preferred_element_type=jnp.float32)

    @pl.when(k == pl.num_programs(2) - 1)
    def _():
        # Bias added exactly once, in the finalize branch.
        o_ref[...] = (acc_ref[...] + b_ref[...]).astype(o_ref.dtype)


def _linear_kernel_resident(x_ref, wt_ref, b_ref, o_ref, acc_ref, *, tn, tk):
    """Resident path: wt_ref holds the FULL padded W^T (Kp, Np) in VMEM.

    The (tk, tn) slab for this grid step is sliced in-kernel at tile-aligned
    (multiple-of-128) offsets, so the weight is DMA'd from HBM exactly once
    for the whole kernel instead of once per M tile.
    """
    j = pl.program_id(1)
    k = pl.program_id(2)

    @pl.when(k == 0)
    def _():
        acc_ref[...] = jnp.zeros_like(acc_ref)

    row = pl.multiple_of(k * tk, tk)
    col = pl.multiple_of(j * tn, tn)
    w_tile = wt_ref[pl.ds(row, tk), pl.ds(col, tn)]
    acc_ref[...] += jnp.dot(x_ref[...], w_tile,
                            preferred_element_type=jnp.float32)

    @pl.when(k == pl.num_programs(2) - 1)
    def _():
        o_ref[...] = (acc_ref[...] + b_ref[...]).astype(o_ref.dtype)


def linear_pallas(x, weight, bias, *, tm=512, tn=512, tk=512,
                  compute_dtype=None,
                  w_resident_bytes=8 * 1024 * 1024,
                  x_buffers=None,
                  vmem_limit_bytes=None):
    """x: (M, in), weight: (out, in) [PyTorch layout], bias: (out,) -> (M, out).

    compute_dtype: optionally cast operands (e.g. jnp.bfloat16) for the MXU;
                   accumulation stays f32, output keeps x's original dtype.
    w_resident_bytes: keep the whole padded W^T resident in VMEM if its array
                   size is <= this (default 8 MiB -> ~16 MiB double-buffered,
                   safe on v7x's 32 MiB scoped default; raise to 32-48 MiB on
                   v5e/v6e together with vmem_limit_bytes).
    x_buffers:     optional deeper pipelining for the x stream (e.g. 3 on v7x
                   once W is resident and DMA latency is still exposed).
    """
    M, K = x.shape
    N, K_w = weight.shape
    assert K == K_w
    assert bias.shape == (N,)

    out_dtype = x.dtype

    # One-time wrapper transpose of the (static) weight to (in, out).  This
    # guarantees the in-kernel dot is the canonical (tm,tk)@(tk,tn) form so no
    # per-K-step weight transpose competes with vmatmul for the extended slots.
    wt = weight.T                      # (K, N)
    if compute_dtype is not None:
        x = x.astype(compute_dtype)
        wt = wt.astype(compute_dtype)
    cdtype = x.dtype
    itemsize = jnp.dtype(cdtype).itemsize
    sub = 8 if itemsize == 4 else (16 if itemsize == 2 else 32)

    # Minimal padding: M to sublane granule, N/K to lane granule, with tiles
    # fitted to divide the padded sizes.  K is zero-padded (safe: contributes
    # zeros to the contraction).
    Mp, tm = _fit_dim(M, tm, sub)
    Kp, tk = _fit_dim(K, tk, 128)
    Np, tn = _fit_dim(N, tn, 128)

    xp = x if (Mp, Kp) == (M, K) else jnp.pad(x, ((0, Mp - M), (0, Kp - K)))
    wtp = wt if (Kp, Np) == (K, N) else jnp.pad(wt, ((0, Kp - K), (0, Np - N)))
    bp = bias if Np == N else jnp.pad(bias, (0, Np - N))
    bp = bp.reshape(1, Np).astype(jnp.float32)

    grid = (Mp // tm, Np // tn, Kp // tk)

    if x_buffers is None:
        x_spec = pl.BlockSpec((tm, tk), lambda i, j, k: (i, k))
    else:
        x_spec = pl.BlockSpec((tm, tk), lambda i, j, k: (i, k),
                              pipeline_mode=pl.Buffered(x_buffers))

    resident = (Kp * Np * itemsize) <= w_resident_bytes
    if resident:
        kernel = functools.partial(_linear_kernel_resident, tn=tn, tk=tk)
        # Constant block index -> the weight is DMA'd into VMEM exactly once.
        w_spec = pl.BlockSpec((Kp, Np), lambda i, j, k: (0, 0))
    else:
        kernel = _linear_kernel_streamed
        w_spec = pl.BlockSpec((tk, tn), lambda i, j, k: (k, j))

    extra_params = {} if vmem_limit_bytes is None else dict(
        vmem_limit_bytes=vmem_limit_bytes)

    out = pl.pallas_call(
        kernel,
        out_shape=jax.ShapeDtypeStruct((Mp, Np), out_dtype),
        grid_spec=pltpu.PrefetchScalarGridSpec(
            num_scalar_prefetch=0,
            grid=grid,
            in_specs=[
                x_spec,                                      # activations
                w_spec,                                      # W^T (resident or streamed)
                pl.BlockSpec((1, tn), lambda i, j, k: (0, j)),  # bias
            ],
            out_specs=pl.BlockSpec((tm, tn), lambda i, j, k: (i, j)),
            scratch_shapes=[pltpu.VMEM((tm, tn), jnp.float32)],
        ),
        compiler_params=pltpu.CompilerParams(
            dimension_semantics=("parallel", "parallel", "arbitrary"),
            **extra_params),
    )(xp, wtp, bp)

    if (Mp, Np) != (M, N):
        out = out[:M, :N]
    return out


def lr_forward(x, weight, bias, **kwargs):
    """Forward pass of the LR module (nn.Linear)."""
    M, K = x.shape
    N = weight.shape[0]
    if M * K * N < 128 ** 3:
        # A pallas_call is pure launch overhead at this size; HIGHEST precision
        # keeps the fallback numerically consistent with the f32-accum kernel.
        return jnp.dot(x, weight.T, precision=jax.lax.Precision.HIGHEST) + bias
    return linear_pallas(x, weight, bias, **kwargs)


if __name__ == "__main__":
    key = jax.random.PRNGKey(0)
    k_w, k_b, k_x2, k_w2, k_b2 = jax.random.split(key, 5)

    # --- 1) The exact module configuration: nn.Linear(1, 1), x = [[1.], [2.]] ---
    input_size, output_size = 1, 1
    bound = 1.0 / (input_size ** 0.5)
    weight = jax.random.uniform(k_w, (output_size, input_size),
                                dtype=jnp.float32, minval=-bound, maxval=bound)
    bias = jax.random.uniform(k_b, (output_size,),
                              dtype=jnp.float32, minval=-bound, maxval=bound)
    x = jnp.array([[1.0], [2.0]], dtype=jnp.float32)
    ref_tiny = x @ weight.T + bias

    # Force the Pallas kernel on the tiny case (padded to one (8,128) tile).
    out_tiny_pallas = jax.block_until_ready(linear_pallas(x, weight, bias))
    assert out_tiny_pallas.shape == (2, 1)
    assert jnp.allclose(out_tiny_pallas, ref_tiny, atol=1e-6), (out_tiny_pallas, ref_tiny)

    # Dispatch path (plain XLA for tiny shapes) must agree too.
    out_tiny = jax.block_until_ready(lr_forward(x, weight, bias))
    assert jnp.allclose(out_tiny, ref_tiny, atol=1e-6), (out_tiny, ref_tiny)

    # --- 2) Ragged larger case: exercises minimal-padding tiling
    #        (M=900 -> 912 rows, tm=456), a (2,2,2) grid, K reduction with the
    #        f32 accumulator, and the resident-W kernel (W^T = 1024x768 f32
    #        ~ 3 MiB, held in VMEM and DMA'd once). ---
    B, In, Out = 900, 1024, 640
    x2 = jax.random.normal(k_x2, (B, In), dtype=jnp.float32)
    w2 = jax.random.normal(k_w2, (Out, In), dtype=jnp.float32) * (1.0 / In ** 0.5)
    b2 = jax.random.normal(k_b2, (Out,), dtype=jnp.float32)
    ref_big = jax.lax.dot_general(
        x2, w2, dimension_numbers=(((1,), (1,)), ((), ())),
        precision=jax.lax.Precision.HIGHEST) + b2

    out_big = jax.block_until_ready(lr_forward(x2, w2, b2))
    assert out_big.shape == (B, Out)
    assert jnp.allclose(out_big, ref_big, rtol=1e-3, atol=1e-3)

    # --- 3) Same shape through the streamed (non-resident) kernel path. ---
    out_stream = jax.block_until_ready(
        linear_pallas(x2, w2, b2, w_resident_bytes=0))
    assert jnp.allclose(out_stream, ref_big, rtol=1e-3, atol=1e-3)

    # --- 4) Optional bf16-operand path (f32 accumulation), looser tolerance. ---
    out_bf16 = jax.block_until_ready(
        linear_pallas(x2, w2, b2, compute_dtype=jnp.bfloat16))
    assert out_bf16.dtype == jnp.float32
    assert jnp.allclose(out_bf16, ref_big, rtol=5e-2, atol=5e-2)

    print("KERNEL_OK")
</pallas_src>

<mosaic_0001>
module attributes {stable_mosaic.version = 11 : i64} {
  func.func @_linear_kernel_resident(%arg0: i32, %arg1: i32, %arg2: i32, %arg3: memref<8x128xf32, #tpu.memory_space<vmem>>, %arg4: memref<128x128xf32, #tpu.memory_space<vmem>>, %arg5: memref<1x128xf32, #tpu.memory_space<vmem>>, %arg6: memref<8x128xf32, #tpu.memory_space<vmem>>, %arg7: memref<8x128xf32, #tpu.memory_space<vmem>>) attributes {dimension_semantics = [#tpu.dimension_semantics<parallel>, #tpu.dimension_semantics<parallel>, #tpu.dimension_semantics<arbitrary>], iteration_bounds = array<i64: 1, 1, 1>, scalar_prefetch = 0 : i64, scratch_operands = 1 : i64, tpu.core_type = #tpu.core_type<tc>, window_params = [{transform_indices = @transform_0, window_bounds = array<i64: 8, 128>}, {pipeline_mode = #tpu.pipeline_mode<synchronous>, transform_indices = @transform_1, window_bounds = array<i64: 128, 128>}, {transform_indices = @transform_2, window_bounds = array<i64: 1, 128>}, {transform_indices = @transform_3, window_bounds = array<i64: 8, 128>}]} {
    %c0_i32 = arith.constant 0 : i32
    %0 = arith.cmpi eq, %arg2, %c0_i32 : i32
    %1 = arith.extui %0 : i1 to i32
    %c0_i32_0 = arith.constant 0 : i32
    %2 = arith.cmpi ne, %1, %c0_i32_0 : i32
    scf.if %2 {
      %cst_9 = arith.constant 0.000000e+00 : f32
      %18 = vector.broadcast %cst_9 : f32 to vector<8x128xf32>
      %c0_10 = arith.constant 0 : index
      %c0_11 = arith.constant 0 : index
      %19 = vector.load %arg7[%c0_10, %c0_11] : memref<8x128xf32, #tpu.memory_space<vmem>>, vector<8x128xf32>
      tpu.vector_store %arg7[%c0_10, %c0_11], %18 {strides = array<i32>} : memref<8x128xf32, #tpu.memory_space<vmem>>, vector<8x128xf32>,
    } else {
    }
    %c128_i32 = arith.constant 128 : i32
    %3 = arith.muli %arg2, %c128_i32 : i32
    %4 = tpu.assume_multiple %3, 128 : i32
    %c128_i32_1 = arith.constant 128 : i32
    %5 = arith.muli %arg1, %c128_i32_1 : i32
    %6 = tpu.assume_multiple %5, 128 : i32
    %7 = arith.index_cast %4 : i32 to index
    %8 = arith.index_cast %6 : i32 to index
    %9 = vector.load %arg4[%7, %8] : memref<128x128xf32, #tpu.memory_space<vmem>>, vector<128x128xf32>
    %c0 = arith.constant 0 : index
    %c0_2 = arith.constant 0 : index
    %10 = vector.load %arg7[%c0, %c0_2] : memref<8x128xf32, #tpu.memory_space<vmem>>, vector<8x128xf32>
    %c0_3 = arith.constant 0 : index
    %c0_4 = arith.constant 0 : index
    %11 = vector.load %arg3[%c0_3, %c0_4] : memref<8x128xf32, #tpu.memory_space<vmem>>, vector<8x128xf32>
    %cst = arith.constant dense<0.000000e+00> : vector<8x128xf32>
    %12 = tpu.matmul %11, %9, %cst {dimension_numbers = #tpu.dot_dimension_numbers<[1], [0], [0], [1], [0, 0, 1, 1], [], []>} : vector<8x128xf32>, vector<128x128xf32>, vector<8x128xf32> -> vector<8x128xf32>
    %13 = arith.addf %10, %12 : vector<8x128xf32>
    %c0_5 = arith.constant 0 : index
    %c0_6 = arith.constant 0 : index
    %14 = vector.load %arg7[%c0_5, %c0_6] : memref<8x128xf32, #tpu.memory_space<vmem>>, vector<8x128xf32>
    tpu.vector_store %arg7[%c0_5, %c0_6], %13 {strides = array<i32>} : memref<8x128xf32, #tpu.memory_space<vmem>>, vector<8x128xf32>,
    %c0_i32_7 = arith.constant 0 : i32
    %15 = arith.cmpi eq, %arg2, %c0_i32_7 : i32
    %16 = arith.extui %15 : i1 to i32
    %c0_i32_8 = arith.constant 0 : i32
    %17 = arith.cmpi ne, %16, %c0_i32_8 : i32
    scf.if %17 {
      %c0_9 = arith.constant 0 : index
      %c0_10 = arith.constant 0 : index
      %18 = vector.load %arg7[%c0_9, %c0_10] : memref<8x128xf32, #tpu.memory_space<vmem>>, vector<8x128xf32>
      %c0_11 = arith.constant 0 : index
      %c0_12 = arith.constant 0 : index
      %19 = vector.load %arg5[%c0_11, %c0_12] : memref<1x128xf32, #tpu.memory_space<vmem>>, vector<1x128xf32>
      %20 = vector.broadcast %19 : vector<1x128xf32> to vector<8x128xf32>
      %21 = arith.addf %18, %20 : vector<8x128xf32>
      %c0_13 = arith.constant 0 : index
      %c0_14 = arith.constant 0 : index
      %22 = vector.load %arg6[%c0_13, %c0_14] : memref<8x128xf32, #tpu.memory_space<vmem>>, vector<8x128xf32>
      tpu.vector_store %arg6[%c0_13, %c0_14], %21 {strides = array<i32>} : memref<8x128xf32, #tpu.memory_space<vmem>>, vector<8x128xf32>,
    } else {
    }
    return
  }
  func.func @transform_0(%arg0: i32, %arg1: i32, %arg2: i32) -> (i32, i32) {
    %c0_i32 = arith.constant 0 : i32
    return %arg0, %arg2 : i32, i32
  }
  func.func @transform_1(%arg0: i32, %arg1: i32, %arg2: i32) -> (i32, i32) {
    %c0_i32 = arith.constant 0 : i32
    %c0_i32_0 = arith.constant 0 : i32
    %c0_i32_1 = arith.constant 0 : i32
    return %c0_i32, %c0_i32_0 : i32, i32
  }
  func.func @transform_2(%arg0: i32, %arg1: i32, %arg2: i32) -> (i32, i32) {
    %c0_i32 = arith.constant 0 : i32
    %c0_i32_0 = arith.constant 0 : i32
    return %c0_i32, %arg1 : i32, i32
  }
  func.func @transform_3(%arg0: i32, %arg1: i32, %arg2: i32) -> (i32, i32) {
    %c0_i32 = arith.constant 0 : i32
    return %arg0, %arg1 : i32, i32
  }
}

</mosaic_0001>

<bundles_post_ra>
// kernel: tpu_custom_call.1
= control target key start
LH: loop header
LB: loop body
LE: loop exit
PB: predicated region body
PF: predicated region fallthrough
CT: control target
= control target key end

     0   :  { %8 = vsyncpa [#allocation4], 0  ;;  %s403_s0 = inlined_call_operand.hbm [shape: f32[8,128], index: 0, kind: input, shape index: {}]   ;;  %s404_s1 = inlined_call_operand.hbm [shape: f32[128,128], index: 1, kind: input, shape index: {}]   ;;  %s405_s2 = inlined_call_operand.vmem [shape: f32[1,128], index: 2, kind: input, shape index: {}]   ;;  %s406_s3 = inlined_call_operand.hbm [shape: f32[8,128], index: 3, kind: output, shape index: {}]  }
   0x1   :  { %9 = vsyncpa [#allocation7], 0 }
   0x2   :  { %10 = vsyncpa [#allocation5], 0  ;;  %s329_s12 = smov [#allocation3]   ;;  %s330_s14 = smov [#allocation6]  }
   0x3   :  { %s17_s13 = sshll.u32 %s329_s12, 4  ;;  %s26_s15 = sshll.u32 %s330_s14, 4  ;;  %s18_s13 = int_to_ptr.vmem [resolvable:$true] %s17_s13  ;;  %s357_s15 = int_to_ptr.vmem [resolvable:$true] %s26_s15 }
   0x4   :  { %s257_s18 = scalar_lea.hbm %s403_s0, 128 }
   0x5   :  { %p258_p0 = scmp.ne.s32.totalorder %s403_s0, %s257_s18  ;;  %p261_p1 = scmp.lt.u32.totalorder %s257_s18, %s403_s0 }
   0x7   :  { %p263_p2 = pnand %p261_p1, %p258_p0 }
   0x9   :  { %266 = shalt.err (!%p263_p2)
}
   0xa   :  { %s267_s23 = scalar_lea.vmem %s18_s13, 128  ;;  %p272_p4 = scmp.lt.s32.totalorder %s18_s13, %s18_s13 }
   0xb   :  { %p268_p3 = scmp.ne.s32.totalorder %s18_s13, %s267_s23  ;;  %p273_p5 = scmp.lt.s32.totalorder %s267_s23, %s267_s23 }
   0xd   :  { %p274_p6 = por %p273_p5, %p272_p4 }
   0xf   :  { %p275_p7 = pnand %p274_p6, %p268_p3 }
  0x11   :  { %278 = shalt.err (!%p275_p7)
}
  0x12   :  { %20 = dma.hbm_to_vmem [thread:$0]  %s403_s0, 128, %s18_s13, [#allocation4]  }
  0x13   :  { %s279_s28 = scalar_lea.hbm %s404_s1, 2048 }
  0x14   :  { %p280_p8 = scmp.ne.s32.totalorder %s404_s1, %s279_s28  ;;  %p283_p9 = scmp.lt.u32.totalorder %s279_s28, %s404_s1 }
  0x16   :  { %p285_p10 = pnand %p283_p9, %p280_p8 }
  0x18   :  { %288 = shalt.err (!%p285_p10)
}
  0x19   :  { %s289_s6 = scalar_lea.vmem %s357_s15, 2048  ;;  %p294_p12 = scmp.lt.s32.totalorder %s357_s15, %s357_s15 }
  0x1a   :  { %p290_p11 = scmp.ne.s32.totalorder %s357_s15, %s289_s6  ;;  %p295_p13 = scmp.lt.s32.totalorder %s289_s6, %s289_s6 }
  0x1c   :  { %p296_p0 = por %p295_p13, %p294_p12 }
  0x1e   :  { %p297_p1 = pnand %p296_p0, %p290_p11 }
  0x20   :  { %300 = shalt.err (!%p297_p1)
}
  0x21   :  { %s331_s0 = smov 128   ;;  %s332_s7 = smov 8  }
  0x22   :  { %32 = dma.hbm_to_vmem [thread:$0]  %s404_s1, 2048, %s357_s15, [#allocation7], %s331_s0, %s331_s0, %s332_s7  }
  0x23   :  { %323 = dma.done.wait [#allocation4], 128  }
  0x24   :  { %324 = vsyncadd [#allocation4], 4294967168 }
  0x25   :  { %325 = dma.done.wait [#allocation7], 2048  }
  0x26   :  { %326 = vsyncadd [#allocation7], 4294965248  ;;  %v333_v0 = vmov 0.0|0.0   ;;  %vm334_vm0 = vmmov 0   ;;  %v335_v1 = vmov 0.0   ;;  %v52_v2 = vld [vmem:[#allocation6] sm:$0xff] }
  0x27   :  { %225 = vmatprep.subr.bf16.mxu0 %v333_v0  ;;  %222 = vmatprep.mubr.msk.f32.mxu0 %vm334_vm0, %v335_v1  ;;  %v53_v3 = vld [vmem:[#allocation6 + $0x8] sm:$0xff]  ;;  %v54_v4 = vld [vmem:[#allocation6 + $0x10] sm:$0xff]  ;;  %v55_v6 = vld [vmem:[#allocation6 + $0x18] sm:$0xff]  ;;  %s336_s11 = smov [#allocation8]  }
  0x28   :  { %v226_v5 = vpack.c.bf16 %v53_v3, %v52_v2  ;;  %v229_v7 = vpack.c.bf16 %v55_v6, %v54_v4  ;;  %v56_v8 = vld [vmem:[#allocation6 + $0x20] sm:$0xff]  ;;  %v57_v9 = vld [vmem:[#allocation6 + $0x28] sm:$0xff]  ;;  %v58_v11 = vld [vmem:[#allocation6 + $0x30] sm:$0xff]  ;;  %s161_s12 = sshll.u32 %s336_s11, 4  ;;  %s162_s12 = int_to_ptr.vmem [resolvable:$true] %s161_s12 }
  0x29   :  { %v232_v10 = vpack.c.bf16 %v57_v9, %v56_v8  ;;  %v59_v12 = vld [vmem:[#allocation6 + $0x38] sm:$0xff]  ;;  %v60_v14 = vld [vmem:[#allocation6 + $0x40] sm:$0xff]  ;;  %v61_v15 = vld [vmem:[#allocation6 + $0x48] sm:$0xff]  ;;  %s301_s13 = scalar_lea.vmem %s162_s12, 128  ;;  %p306_p3 = scmp.lt.s32.totalorder %s162_s12, %s162_s12 }
  0x2a   :  { %227 = vmatpush3.bf16.msra.mxu0 %v226_v5  ;;  %v235_v13 = vpack.c.bf16 %v59_v12, %v58_v11  ;;  %v238_v16 = vpack.c.bf16 %v61_v15, %v60_v14  ;;  %v62_v17 = vld [vmem:[#allocation6 + $0x50] sm:$0xff]  ;;  %v63_v18 = vld [vmem:[#allocation6 + $0x58] sm:$0xff]  ;;  %v64_v20 = vld [vmem:[#allocation6 + $0x60] sm:$0xff]  ;;  %p302_p2 = scmp.ne.s32.totalorder %s162_s12, %s301_s13  ;;  %p307_p4 = scmp.lt.s32.totalorder %s301_s13, %s301_s13 }
  0x2b   :  { %228 = vmatprep.subr.bf16.mxu0 %v333_v0  ;;  %v241_v19 = vpack.c.bf16 %v63_v18, %v62_v17  ;;  %v65_v21 = vld [vmem:[#allocation6 + $0x68] sm:$0xff]  ;;  %v66_v23 = vld [vmem:[#allocation6 + $0x70] sm:$0xff]  ;;  %v67_v24 = vld [vmem:[#allocation6 + $0x78] sm:$0xff] }
  0x2c   :  { %v244_v22 = vpack.c.bf16 %v65_v21, %v64_v20  ;;  %v247_v25 = vpack.c.bf16 %v67_v24, %v66_v23  ;;  %v69_v26 = vld [vmem:[#allocation3] sm:$0xff]  ;;  %p308_p5 = por %p307_p4, %p306_p3 }
  0x2d   :  { %v172_v27 = vld [vmem:[%s405_s2] ss:$0 sm:$0xff] }
  0x2e   :  { %230 = vmatpush3.bf16.msra.mxu0 %v229_v7  ;;  %p309_p6 = pnand %p308_p5, %p302_p2 }
  0x2f   :  { %231 = vmatprep.subr.bf16.mxu0 %v333_v0 }
  0x32   :  { %233 = vmatpush3.bf16.msra.mxu0 %v232_v10 }
  0x33   :  { %234 = vmatprep.subr.bf16.mxu0 %v333_v0 }
  0x36   :  { %236 = vmatpush3.bf16.msra.mxu0 %v235_v13 }
  0x37   :  { %237 = vmatprep.subr.bf16.mxu0 %v333_v0 }
  0x3a   :  { %239 = vmatpush3.bf16.msra.mxu0 %v238_v16 }
  0x3b   :  { %240 = vmatprep.subr.bf16.mxu0 %v333_v0 }
  0x3e   :  { %242 = vmatpush3.bf16.msra.mxu0 %v241_v19 }
  0x3f   :  { %243 = vmatprep.subr.bf16.mxu0 %v333_v0 }
  0x42   :  { %245 = vmatpush3.bf16.msra.mxu0 %v244_v22 }
  0x43   :  { %246 = vmatprep.subr.bf16.mxu0 %v333_v0 }
  0x46   :  { %248 = vmatpush3.bf16.msra.mxu0 %v247_v25 }
  0x49   :  { %223 = vmatmul.mubr.f32.vlgmr.msra.gmra.mrb[0].mxu0 %v69_v26 }
 0x11c   :  { %v136_v28 = vpop.f32.mrb[0].mxu0 }
 0x11d   :  { %v153_v29 = vadd.f32 %v172_v27, %v136_v28  ;;  %v224_v30 = vpop.f32.mrb[1].mxu0 }
 0x11f   :  { %154 = vst [vmem:[#allocation8] sm:$0xff] %v153_v29 }
 0x120   :  { %312 = shalt.err (!%p309_p6)
}
 0x121   :  { %s313_s16 = scalar_lea.hbm %s406_s3, 128 }
 0x122   :  { %p314_p7 = scmp.ne.s32.totalorder %s406_s3, %s313_s16  ;;  %p317_p8 = scmp.lt.u32.totalorder %s313_s16, %s406_s3 }
 0x124   :  { %p319_p9 = pnand %p317_p8, %p314_p7 }
 0x126   :  { %322 = shalt.err (!%p319_p9)
}
 0x127   :  { %164 = dma.vmem_to_hbm [thread:$0]  %s162_s12, 128, %s406_s3, [#allocation5]  }
 0x128   :  { %327 = dma.done.wait [#allocation5], 128  }
 0x129   :  { %328 = vsyncadd [#allocation5], 4294967168 }
 0x12a   :  { %168 = vsyncpa [#allocation4], 1 }
 0x12b   :  { %169 = vsyncpa [#allocation7], 1 }
 0x12c   :  { %170 = vsyncpa [#allocation5], 1 }

</bundles_post_ra>
